<compile_context>
chip_gen: v7x
topology: tpu7x:2x2x1
jax: 0.10.0
libtpu: 0.0.40
codegen_flags: <defaults>
</compile_context>

<pallas_src>
import jax
import jax.numpy as jnp
from jax.experimental import pallas as pl
from jax.experimental.pallas import tpu as pltpu


def _make_pad_kernel(c: int, size: int, tb: int, ts: int, dtype):
    """Kernel that channel-pads a (tb, c, ts) tile into a (tb, c + 2*size, ts) tile."""

    def pad_kernel(x_ref, o_ref):
        # x_ref: (tb, c, ts), o_ref: (tb, c + 2*size, ts); lane axis = ts
        if size > 0:
            zeros = jnp.zeros((tb, size, ts), dtype)
            o_ref[:, :size, :] = zeros
            o_ref[:, size + c:, :] = zeros
        o_ref[:, size:size + c, :] = x_ref[...]

    return pad_kernel


def _choose_tiles(n, c, c_out, hw, dtype, target_bytes=12 << 20):
    """Pick (tb, ts) so each grid step moves ~target_bytes of in+out VMEM bytes.

    Accounts for sublane padding of the channel (second-minor) axis and keeps
    at least 2 grid steps when the problem allows, so both TensorCores get work.
    """
    itemsize = jnp.dtype(dtype).itemsize
    g = max(8, 32 // itemsize)                    # sublane granule: 8 f32, 16 bf16, 32 i8
    c_pad = -(-c // g) * g
    cout_pad = -(-c_out // g) * g
    per_col = (c_pad + cout_pad) * itemsize       # padded VMEM bytes (in+out) per lane col

    # Spatial (lane) tile: full H*W unless one batch element already blows the budget.
    if hw <= 128 or per_col * hw <= target_bytes:
        ts = hw
    else:
        ts = max(128, (target_bytes // per_col) // 128 * 128)
        ts = min(ts, (hw // 128) * 128)           # cdiv grid handles the ragged tail

    # Batch tile: as many elements per step as the budget allows (cdiv grid masks tail).
    per_b = per_col * ts
    tb = int(max(1, min(n, target_bytes // max(per_b, 1))))

    # Keep >= 2 grid steps when possible (megacore / v7x 2-TC sharding of a
    # bandwidth-bound kernel); splitting a tile that fit the budget always fits.
    if n >= 2 and pl.cdiv(n, tb) * pl.cdiv(hw, ts) < 2:
        tb = pl.cdiv(n, 2)
    elif n == 1 and pl.cdiv(hw, ts) < 2 and hw >= 256:
        ts = max(128, ((hw + 1) // 2) // 128 * 128)

    return tb, ts


def channel_pad(x: jax.Array, size: int) -> jax.Array:
    """Equivalent of pad(size).forward(x) for NCHW input x."""
    n, c, h, w = x.shape
    c_out = c + 2 * size
    hw = h * w
    itemsize = jnp.dtype(x.dtype).itemsize

    # Lane-dense layout: fold H*W onto the trailing (lane) axis; undone after the call.
    x2 = x.reshape(n, c, hw)
    tb, ts = _choose_tiles(n, c, c_out, hw, x.dtype)

    kernel = _make_pad_kernel(c, size, tb, ts, x.dtype)

    out2 = pl.pallas_call(
        kernel,
        out_shape=jax.ShapeDtypeStruct((n, c_out, hw), x.dtype),
        grid_spec=pltpu.PrefetchScalarGridSpec(
            num_scalar_prefetch=0,
            grid=(pl.cdiv(n, tb), pl.cdiv(hw, ts)),
            in_specs=[
                pl.BlockSpec((tb, c, ts), lambda b, s: (b, 0, s)),
            ],
            out_specs=pl.BlockSpec((tb, c_out, ts), lambda b, s: (b, 0, s)),
        ),
        compiler_params=pltpu.CompilerParams(
            dimension_semantics=("parallel", "parallel"),
            vmem_limit_bytes=48 << 20,
        ),
        cost_estimate=pl.CostEstimate(
            flops=0,
            transcendentals=0,
            bytes_accessed=(n * c * hw + n * c_out * hw) * itemsize,
        ),
    )(x2)

    return out2.reshape(n, c_out, h, w)


if __name__ == "__main__":
    key = jax.random.PRNGKey(0)
    # Small NCHW input consistent with the module's usage.
    N, C, H, W = 2, 4, 16, 16
    size = 2
    x = jax.random.normal(key, (N, C, H, W), dtype=jnp.float32)

    out = channel_pad(x, size)
    out = jax.block_until_ready(out)

    # Reference: zero-pad the channel dim (what permute/ZeroPad2d/permute does).
    ref = jnp.pad(x, ((0, 0), (size, size), (0, 0), (0, 0)))

    assert out.shape == (N, C + 2 * size, H, W), out.shape
    assert jnp.allclose(out, ref), "mismatch vs reference"

    print("KERNEL_OK")
</pallas_src>

<mosaic_0001>
module attributes {stable_mosaic.version = 11 : i64} {
  func.func @pad_kernel(%arg0: i32, %arg1: i32, %arg2: memref<1x4x256xf32, #tpu.memory_space<vmem>>, %arg3: memref<1x8x256xf32, #tpu.memory_space<vmem>>) attributes {dimension_semantics = [#tpu.dimension_semantics<parallel>, #tpu.dimension_semantics<parallel>], iteration_bounds = array<i64: 2, 1>, scalar_prefetch = 0 : i64, scratch_operands = 0 : i64, tpu.core_type = #tpu.core_type<tc>, window_params = [{transform_indices = @transform_0, window_bounds = array<i64: 1, 4, 256>}, {transform_indices = @transform_1, window_bounds = array<i64: 1, 8, 256>}]} {
    %cst = arith.constant 0.000000e+00 : f32
    %0 = vector.broadcast %cst : f32 to vector<1x2x256xf32>
    %c0 = arith.constant 0 : index
    %c0_0 = arith.constant 0 : index
    %c0_1 = arith.constant 0 : index
    %1 = vector.load %arg3[%c0, %c0_0, %c0_1] : memref<1x8x256xf32, #tpu.memory_space<vmem>>, vector<1x2x256xf32>
    tpu.vector_store %arg3[%c0, %c0_0, %c0_1], %0 {strides = array<i32>} : memref<1x8x256xf32, #tpu.memory_space<vmem>>, vector<1x2x256xf32>,
    %c0_2 = arith.constant 0 : index
    %c6 = arith.constant 6 : index
    %c0_3 = arith.constant 0 : index
    %2 = vector.load %arg3[%c0_2, %c6, %c0_3] : memref<1x8x256xf32, #tpu.memory_space<vmem>>, vector<1x2x256xf32>
    tpu.vector_store %arg3[%c0_2, %c6, %c0_3], %0 {strides = array<i32>} : memref<1x8x256xf32, #tpu.memory_space<vmem>>, vector<1x2x256xf32>,
    %c0_4 = arith.constant 0 : index
    %c0_5 = arith.constant 0 : index
    %c0_6 = arith.constant 0 : index
    %3 = vector.load %arg2[%c0_4, %c0_5, %c0_6] : memref<1x4x256xf32, #tpu.memory_space<vmem>>, vector<1x4x256xf32>
    %c0_7 = arith.constant 0 : index
    %c2 = arith.constant 2 : index
    %c0_8 = arith.constant 0 : index
    %4 = vector.load %arg3[%c0_7, %c2, %c0_8] : memref<1x8x256xf32, #tpu.memory_space<vmem>>, vector<1x4x256xf32>
    tpu.vector_store %arg3[%c0_7, %c2, %c0_8], %3 {strides = array<i32>} : memref<1x8x256xf32, #tpu.memory_space<vmem>>, vector<1x4x256xf32>,
    return
  }
  func.func @transform_0(%arg0: i32, %arg1: i32) -> (i32, i32, i32) {
    %c0_i32 = arith.constant 0 : i32
    %c0_i32_0 = arith.constant 0 : i32
    return %arg0, %c0_i32, %arg1 : i32, i32, i32
  }
  func.func @transform_1(%arg0: i32, %arg1: i32) -> (i32, i32, i32) {
    %c0_i32 = arith.constant 0 : i32
    %c0_i32_0 = arith.constant 0 : i32
    return %arg0, %c0_i32, %arg1 : i32, i32, i32
  }
}

</mosaic_0001>

<bundles_post_ra>
// kernel: tpu_custom_call.1
= control target key start
LH: loop header
LB: loop body
LE: loop exit
PB: predicated region body
PF: predicated region fallthrough
CT: control target
= control target key end

     0   :  { %6 = vsyncpa [#allocation3], 0  ;;  %s648_s0 = inlined_call_operand.hbm [shape: f32[2,4,256], index: 0, kind: input, shape index: {}]   ;;  %s649_s1 = inlined_call_operand.hbm [shape: f32[2,8,256], index: 1, kind: output, shape index: {}]  }
   0x1   :  { %8 = vsyncpa [#allocation3 + $0x1], 0 }
   0x2   :  { %9 = vsyncpa [#allocation4], 0 }
   0x3   :  { %11 = vsyncpa [#allocation4 + $0x1], 0  ;;  %s475_s6 = smov 0   ;;  %s477_s7 = smov 0  }
   0x4   :  { %s479_s8 = smov 0   ;;  %s481_s9 = smov 0  }
   0x5   :  { %s483_s10 = smov 0   ;;  %s485_s11 = smov 0  }
   0x6 LB: > { %s267_s12 = sadd.s32 4294967295, %s460_s11   ;;  %s268_s13 = sadd.s32 4294967294, %s460_s11   ;;  %s460_s11 = sphi %s485_s11, %s17_s11   ;;  %s456_s10 = sphi %s483_s10, %s665_s10   ;;  %s452_s9 = sphi %s481_s9, %s664_s9   ;;  %s448_s8 = sphi %s479_s8, %s663_s8   ;;  %s444_s7 = sphi %s477_s7, %s662_s7   ;;  %s440_s6 = sphi %s475_s6, %s661_s6  }
   0x7   : > { %s29_s14 = sadd.s32 1, %s456_s10  ;;  %s38_s15 = sadd.s32 1, %s448_s8 }
   0x8   : > { %p31_p0 = scmp.ge.s32.totalorder %s29_s14, 2  ;;  %p45_p1 = scmp.ne.s32.totalorder %s448_s8, %s444_s7 }
   0x9   : > { %p46_p2 = scmp.eq.s32.totalorder %s460_s11, 0  ;;  %p51_p3 = scmp.ne.s32.totalorder %s444_s7, %s440_s6 }
   0xa   : > { %s667_s14 = smov (%p31_p0, %s29_s14), 0  ;;  %p52_p5 = scmp.eq.s32.totalorder %s267_s12, 0 }
   0xb   : > { %p516_p4 = por %p46_p2, %p45_p1  ;;  %s33_s17 = ssub.s32 %s456_s10, %s667_s14 }
   0xc   : > { %p77_p6 = scmp.eq.s32.totalorder %s267_s12, 1  ;;  %p36_p7 = scmp.eq.s32.totalorder %s33_s17, 0 }
   0xd   : > { %p522_p8 = por %p52_p5, %p51_p3  ;;  %p83_p10 = scmp.eq.s32.totalorder %s268_s13, 1 }
   0xe   : > { %p526_p9 = por %p77_p6, %p45_p1  ;;  %p296_p13 = scmp.lt.s32.totalorder %s460_s11, 2 }
   0xf   : > { %s531_s20 = scalar_select %p36_p7, %s448_s8, %s38_s15  }
  0x10   : > { %s653_s19 = scalar_select %p526_p9, 1, 0 }
  0x11   : > { %p533_p11 = por %p83_p10, %p51_p3  ;;  %s103_s22 = sand.u32 1, %s448_s8  }
  0x12   : > { %s271_s23 = sshll.u32 %s103_s22, 3  ;;  %s282_s24 = sshll.u32 %s456_s10, 7 }
  0x13   : > { %s654_s21 = scalar_select %p533_p11, 1, 0 }
  0x14   : > { %s544_s27 = scalar_lea.hbm %s648_s0, %s282_s24  ;;  %s107_s28 = scalar_lea.vmem [#allocation2], %s271_s23 }
  0x15   : > { %s117_s29 = sshll.u32 %s107_s28, 4  ;;  %p550_p0 = pnand %p296_p13, %p516_p4  ;;  %s546_s29 = int_to_ptr.vmem [resolvable:$true] %s117_s29 }
  0x16   : > { %s104_s2 = scalar_lea.sflag [#allocation3], %s103_s22  ;;  %s348_s3 = scalar_lea.hbm %s544_s27, 128 }
  0x17   : > { %p349_p3 = scmp.ne.s32.totalorder %s544_s27, %s348_s3  ;;  %p350_p5 = pneg %p550_p0 }
  0x18   : > { %s353_s12 = scalar_lea.hbm %s648_s0, 256  ;;  %p354_p4 = scmp.lt.u32.totalorder %s544_s27, %s648_s0 }
  0x19   : > { %p351_p6 = pnand %p350_p5, %p349_p3  ;;  %p355_p10 = scmp.lt.u32.totalorder %s353_s12, %s348_s3 }
  0x1a   : > { %p357_p12 = scmp.lt.u32.totalorder %s348_s3, %s544_s27 }
  0x1b   : > { %p352_p7 = pneg %p351_p6  ;;  %p356_p13 = por %p355_p10, %p354_p4 }
  0x1d   : > { %p358_p1 = por %p357_p12, %p356_p13 }
  0x1f   : > { %p359_p2 = pnand %p358_p1, %p352_p7 }
  0x21   : > { %362 = shalt.err (!%p359_p2)
}
  0x22   : > { %s363_s16 = scalar_lea.vmem %s546_s29, 128  ;;  %s462_s17 = smov [#allocation2]  }
  0x23   : > { %p364_p3 = scmp.ne.s32.totalorder %s546_s29, %s363_s16  ;;  %s368_s22 = sshll.u32 %s462_s17, 4  ;;  %s369_s22 = int_to_ptr.vmem [resolvable:$false] %s368_s22 }
  0x24   : > { %s370_s23 = scalar_lea.vmem %s369_s22, 256  ;;  %p371_p9 = scmp.lt.s32.totalorder %s546_s29, %s369_s22 }
  0x25   : > { %p366_p6 = pnand %p364_p3, %p350_p5  ;;  %p372_p4 = scmp.lt.s32.totalorder %s370_s23, %s363_s16 }
  0x27   : > { %p367_p11 = pneg %p366_p6  ;;  %p373_p10 = por %p372_p4, %p371_p9 }
  0x29   : > { %p374_p12 = pnand %p373_p10, %p367_p11 }
  0x2b   : > { %377 = shalt.err (!%p374_p12)
}
  0x2c   : > { %291 = dma.hbm_to_vmem [thread:$0]  (!%p550_p0), %s544_s27, 128, %s546_s29, %s104_s2  }
  0x2d   : > { %p656_p1 = scmp.lt.s32.totalorder %s460_s11, 3  ;;  %p657_p2 = scmp.ge.s32.totalorder %s460_s11, 1 }
  0x2f   : > { %p123_p5 = pnand %p657_p2, %p656_p1 }
  0x30   : > { %s586_s24 = sand.u32 (!%p123_p5), 1, %s444_s7  }
  0x31   : > { %126 = sbr.rel (%p123_p5) target bundleno = 83 (0x53), region = 24  ;;  %s275_s25 = sshll.u32 (!%p123_p5), %s586_s24, 3 }
  0x32   : > { %s129_s26 = scalar_lea.sflag (!%p123_p5), [#allocation3], %s586_s24  ;;  %s132_s28 = scalar_lea.vmem (!%p123_p5), [#allocation2], %s275_s25 }
  0x38   : > { %431 = dma.done.wait (%p522_p8), %s129_s26, 128  }
  0x39   : > { %433 = vsyncadd (%p522_p8), %s129_s26, 4294967168  ;;  %s276_s27 = sshll.u32 %s586_s24, 4  ;;  %v463_v0 = vmov 0.0   ;;  %v157_v1 = vld [vmem:[%s132_s28] sm:$0xff]  ;;  %s283_s2 = sshll.u32 %s452_s9, 8 }
  0x3a   : > { %s150_s29 = scalar_lea.vmem [#allocation5], %s276_s27  ;;  %v160_v2 = vrot.slane %v157_v1, 6  ;;  %v159_v3 = vcombine.high %v157_v1, %v157_v1  ;;  %s601_s4 = scalar_lea.hbm %s649_s1, %s283_s2 }
  0x3b   : > { %153 = vst [vmem:[%s150_s29] sm:$0x3] %v463_v0  ;;  %154 = vst [vmem:[%s150_s29 + $0x8] sm:$0x3] %v463_v0  ;;  %s183_s30 = sshll.u32 %s150_s29, 4  ;;  %s167_s5 = scalar_lea.sflag [#allocation4], %s586_s24  ;;  %s596_s30 = int_to_ptr.vmem [resolvable:$true] %s183_s30 }
  0x3c   : > { %155 = vst [vmem:[%s150_s29] sm:$0xc0] %v463_v0  ;;  %156 = vst [vmem:[%s150_s29 + $0x8] sm:$0xc0] %v463_v0  ;;  %v161_v4 = vrot.slane %v159_v3, 6  ;;  %s378_s12 = scalar_lea.vmem %s596_s30, 256  ;;  %p658_p9 = scmp.ne.s32.totalorder %s653_s19, 0 }
  0x3d   : > { %164 = vst [vmem:[%s150_s29] sm:$0x3c] %v160_v2  ;;  %p379_p8 = scmp.ne.s32.totalorder %s596_s30, %s378_s12  ;;  %s464_s9 = smov [#allocation5]  }
  0x3e   : > { %165 = vst [vmem:[%s150_s29 + $0x8] sm:$0x3c] %v161_v4  ;;  %s382_s13 = sshll.u32 %s464_s9, 4  ;;  %s383_s13 = int_to_ptr.vmem [resolvable:$false] %s382_s13 }
  0x3f   : > { %p380_p11 = pnand %p379_p8, %p658_p9  ;;  %s384_s15 = scalar_lea.vmem %s383_s13, 512 }
  0x40   : > { %p385_p7 = scmp.lt.s32.totalorder %s596_s30, %s383_s13  ;;  %p386_p13 = scmp.lt.s32.totalorder %s384_s15, %s378_s12 }
  0x41   : > { %p381_p0 = pneg %p380_p11 }
  0x42   : > { %p387_p3 = por %p386_p13, %p385_p7 }
  0x44   : > { %p388_p6 = pnand %p387_p3, %p381_p0 }
  0x46   : > { %391 = shalt.err (!%p388_p6)
}
  0x47   : > { %s392_s16 = scalar_lea.hbm %s601_s4, 256  ;;  %s396_s23 = scalar_lea.hbm %s649_s1, 512 }
  0x48   : > { %p393_p4 = scmp.ne.s32.totalorder %s601_s4, %s392_s16  ;;  %p397_p1 = scmp.lt.u32.totalorder %s601_s4, %s649_s1 }
  0x49   : > { %p398_p2 = scmp.lt.u32.totalorder %s396_s23, %s392_s16  ;;  %p400_p8 = scmp.lt.u32.totalorder %s392_s16, %s601_s4 }
  0x4a   : > { %p394_p10 = pnand %p393_p4, %p658_p9 }
  0x4b   : > { %p399_p5 = por %p398_p2, %p397_p1 }
  0x4c   : > { %p395_p12 = pneg %p394_p10 }
  0x4d   : > { %p401_p11 = por %p400_p8, %p399_p5 }
  0x4f   : > { %p402_p0 = pnand %p401_p11, %p395_p12 }
  0x51   : > { %405 = shalt.err (!%p402_p0)
}
  0x52   : > { %286 = dma.vmem_to_hbm [thread:$0]  (%p658_p9), %s596_s30, 256, %s601_s4, %s167_s5  }
  0x53 PF: > { %s195_s26 = sand.u32 1, %s440_s6   ;;  %p659_p7 = scmp.ne.s32.totalorder %s654_s21, 0 }
  0x54   : > { %p660_p13 = scmp.ge.s32.totalorder %s460_s11, 2  ;;  %s196_s28 = scalar_lea.sflag [#allocation4], %s195_s26 }
  0x56   : > { %p293_p3 = pnand %p660_p13, %p659_p7 }
  0x58   : > { %435 = dma.done.wait (!%p293_p3), %s196_s28, 256  }
  0x59   : > { %437 = vsyncadd (!%p293_p3), %s196_s28, 4294967040  ;;  %s17_s11 = sadd.s32 1, %s460_s11   ;;  %s661_s6 = smov %s444_s7 }
  0x5a   : > { %p14_p6 = scmp.ge.s32.totalorder %s17_s11, 4   ;;  %s662_s7 = smov %s448_s8 }
  0x5b   : > { %s663_s8 = smov %s531_s20  ;;  %s664_s9 = smov %s456_s10 }
  0x5c   : > { %s665_s10 = smov %s667_s14  ;;  %16 = sbr.rel (!%p14_p6) target bundleno = 6 (0x6), region = 69 }
  0x63   :  { %201 = vsyncpa [#allocation3], 1 }
  0x64   :  { %203 = vsyncpa [#allocation3 + $0x1], 1 }
  0x65   :  { %204 = vsyncpa [#allocation4], 1 }
  0x66   :  { %206 = vsyncpa [#allocation4 + $0x1], 1 }

</bundles_post_ra>
